<compile_context>
chip_gen: v6e
topology: v6e:2x2x1
jax: 0.10.0
libtpu: 0.0.40
codegen_flags: <defaults>
</compile_context>

<pallas_src>
import math

import jax
import jax.numpy as jnp
from jax.experimental import pallas as pl
from jax.experimental.pallas import tpu as pltpu

_EPS_NORM = 1e-12          # F.normalize default eps
_EPS_CLIP = 1e-7           # clamp used before acos in the reference

_VMEM_LIMIT_CACHE = None


def _vmem_limit_bytes():
    """Per-generation scoped-VMEM limit (3/4 of capacity, capped)."""
    global _VMEM_LIMIT_CACHE
    if _VMEM_LIMIT_CACHE is None:
        try:
            cap = int(pltpu.get_tpu_info().vmem_capacity_bytes)
        except Exception:
            cap = 64 * 1024 * 1024
        _VMEM_LIMIT_CACHE = max(32 * 1024 * 1024,
                                min((cap * 3) // 4, 96 * 1024 * 1024))
    return _VMEM_LIMIT_CACHE


def _compiler_params(semantics):
    return pltpu.CompilerParams(dimension_semantics=semantics,
                                vmem_limit_bytes=_vmem_limit_bytes())


def _round_up(v, m):
    return ((v + m - 1) // m) * m


def _pad2d(a, rows, cols):
    return jnp.pad(a, ((0, rows - a.shape[0]), (0, cols - a.shape[1])))


def _col_tile(d):
    # v6e/v7x MXU is 2x256x256: prefer 256-multiples when the dim is large.
    if d >= 256:
        return min(512, _round_up(d, 256))
    return _round_up(d, 128)


def _row_tile(n):
    # Cover the whole batch in one i-block when possible so W streams once;
    # multiples of 16 for bf16 sublane packing.  Cap keeps VMEM ~8-10 MiB.
    return min(1024, _round_up(n, 16))


# ---------------------------------------------------------------------------
# Kernel 1: inverse row norms  1 / max(||row||, eps)  (used once per W update)
# ---------------------------------------------------------------------------
def _inv_rownorm_kernel(a_ref, out_ref, acc_ref):
    k = pl.program_id(1)

    @pl.when(k == 0)
    def _():
        acc_ref[...] = jnp.zeros_like(acc_ref)

    a = a_ref[...].astype(jnp.float32)
    acc_ref[...] += jnp.sum(a * a, axis=1, keepdims=True)

    @pl.when(k == pl.num_programs(1) - 1)
    def _():
        # rsqrt(max(ss, eps^2)) == 1 / max(sqrt(ss), eps); rsqrt runs on the EUP.
        out_ref[...] = jax.lax.rsqrt(
            jnp.maximum(acc_ref[...], _EPS_NORM * _EPS_NORM))


def _inv_row_norms(a_pad, tr, tc):
    rows, cols = a_pad.shape
    return pl.pallas_call(
        _inv_rownorm_kernel,
        out_shape=jax.ShapeDtypeStruct((rows, 1), jnp.float32),
        grid_spec=pltpu.PrefetchScalarGridSpec(
            num_scalar_prefetch=0,
            grid=(rows // tr, cols // tc),
            in_specs=[pl.BlockSpec((tr, tc), lambda i, k: (i, k))],
            out_specs=pl.BlockSpec((tr, 1), lambda i, k: (i, 0)),
            scratch_shapes=[pltpu.VMEM((tr, 1), jnp.float32)],
        ),
        compiler_params=_compiler_params(("parallel", "arbitrary")),
    )(a_pad)


# ---------------------------------------------------------------------------
# Kernel 2: scaled cosine logits with fused x row-norm.
#   out = (x @ W^T) * rsqrt(sum(x^2, row)) * scale_row
# Used for the label=None path (scale_row = 1/||W||) and for pass 2 of the
# labeled path (scale_row = s_new / ||W||).  No cross-j state -> j is parallel.
# ---------------------------------------------------------------------------
def _scaled_logits_kernel(x_ref, w_ref, scale_ref, out_ref, acc_ref, xsq_ref):
    k = pl.program_id(2)

    @pl.when(k == 0)
    def _():
        acc_ref[...] = jnp.zeros_like(acc_ref)
        xsq_ref[...] = jnp.zeros_like(xsq_ref)

    x = x_ref[...]
    acc_ref[...] += jax.lax.dot_general(
        x, w_ref[...],
        dimension_numbers=(((1,), (1,)), ((), ())),   # contract F of both: no .T
        preferred_element_type=jnp.float32)
    xf = x.astype(jnp.float32)
    xsq_ref[...] += jnp.sum(xf * xf, axis=1, keepdims=True)

    @pl.when(k == pl.num_programs(2) - 1)
    def _():
        inv_xn = jax.lax.rsqrt(jnp.maximum(xsq_ref[...], _EPS_NORM * _EPS_NORM))
        out_ref[...] = (acc_ref[...] * inv_xn * scale_ref[...]).astype(out_ref.dtype)


def _scaled_logits(x_pad, w_pad, scale_row, tm, tn, tk, out_dtype):
    n_pad, f_pad = x_pad.shape
    c_pad = w_pad.shape[0]
    grid = (n_pad // tm, c_pad // tn, f_pad // tk)
    return pl.pallas_call(
        _scaled_logits_kernel,
        out_shape=jax.ShapeDtypeStruct((n_pad, c_pad), out_dtype),
        grid_spec=pltpu.PrefetchScalarGridSpec(
            num_scalar_prefetch=0,
            grid=grid,
            in_specs=[
                pl.BlockSpec((tm, tk), lambda i, j, k: (i, k)),
                pl.BlockSpec((tn, tk), lambda i, j, k: (j, k)),
                pl.BlockSpec((1, tn), lambda i, j, k: (0, j)),
            ],
            out_specs=pl.BlockSpec((tm, tn), lambda i, j, k: (i, j)),
            scratch_shapes=[pltpu.VMEM((tm, tn), jnp.float32),
                            pltpu.VMEM((tm, 1), jnp.float32)],
        ),
        compiler_params=_compiler_params(("parallel", "parallel", "arbitrary")),
    )(x_pad, w_pad, scale_row)


# ---------------------------------------------------------------------------
# Kernel 3: adaptive-scale statistics only (no logits store), fused x row-norm.
#   bsum[row] = sum over valid non-target classes of exp(s * cos(theta))
#   tgt[row]  = cos(theta_target)
# bsum/tgt accumulate across the C grid axis -> that axis stays "arbitrary".
# ---------------------------------------------------------------------------
def _make_stats_kernel(tn, num_classes, c_pad):
    mask_pad = (c_pad != num_classes)   # trace-time: mask only if C was padded

    def kernel(x_ref, w_ref, iwn_ref, siwn_ref, lbl_ref,
               bsum_ref, tgt_ref, acc_ref, xsq_ref, ixn_ref):
        j = pl.program_id(1)
        k = pl.program_id(2)

        @pl.when(k == 0)
        def _():
            acc_ref[...] = jnp.zeros_like(acc_ref)

        @pl.when(jnp.logical_and(j == 0, k == 0))
        def _():
            xsq_ref[...] = jnp.zeros_like(xsq_ref)

        x = x_ref[...]
        acc_ref[...] += jax.lax.dot_general(
            x, w_ref[...],
            dimension_numbers=(((1,), (1,)), ((), ())),
            preferred_element_type=jnp.float32)

        # x tile is identical for all j; only accumulate norms on the j==0 strip.
        @pl.when(j == 0)
        def _():
            xf = x.astype(jnp.float32)
            xsq_ref[...] += jnp.sum(xf * xf, axis=1, keepdims=True)

        @pl.when(k == pl.num_programs(2) - 1)
        def _():
            @pl.when(j == 0)
            def _():
                ixn_ref[...] = jax.lax.rsqrt(
                    jnp.maximum(xsq_ref[...], _EPS_NORM * _EPS_NORM))

            ixn = ixn_ref[...]
            logits = acc_ref[...] * iwn_ref[...] * ixn       # cos(theta)
            s_logits = acc_ref[...] * siwn_ref[...] * ixn    # s * cos(theta)

            col = jax.lax.broadcasted_iota(jnp.int32, logits.shape, 1) + j * tn
            is_tgt = col == lbl_ref[...]                     # (tm, tn) one-hot

            e = jnp.exp(s_logits)
            if mask_pad:
                e = jnp.where(col < num_classes, e, 0.0)     # drop padded classes
            b_row = jnp.sum(jnp.where(is_tgt, 0.0, e), axis=1, keepdims=True)
            t_row = jnp.sum(jnp.where(is_tgt, logits, 0.0), axis=1, keepdims=True)

            @pl.when(j == 0)
            def _():
                bsum_ref[...] = b_row
                tgt_ref[...] = t_row

            @pl.when(j > 0)
            def _():
                bsum_ref[...] += b_row
                tgt_ref[...] += t_row

    return kernel


def _stats(x_pad, w_pad, iwn_row, siwn_row, label_pad, tm, tn, tk, num_classes):
    n_pad, f_pad = x_pad.shape
    c_pad = w_pad.shape[0]
    grid = (n_pad // tm, c_pad // tn, f_pad // tk)
    kernel = _make_stats_kernel(tn, num_classes, c_pad)
    return pl.pallas_call(
        kernel,
        out_shape=(jax.ShapeDtypeStruct((n_pad, 1), jnp.float32),
                   jax.ShapeDtypeStruct((n_pad, 1), jnp.float32)),
        grid_spec=pltpu.PrefetchScalarGridSpec(
            num_scalar_prefetch=0,
            grid=grid,
            in_specs=[
                pl.BlockSpec((tm, tk), lambda i, j, k: (i, k)),
                pl.BlockSpec((tn, tk), lambda i, j, k: (j, k)),
                pl.BlockSpec((1, tn), lambda i, j, k: (0, j)),
                pl.BlockSpec((1, tn), lambda i, j, k: (0, j)),
                pl.BlockSpec((tm, 1), lambda i, j, k: (i, 0)),
            ],
            out_specs=(
                pl.BlockSpec((tm, 1), lambda i, j, k: (i, 0)),
                pl.BlockSpec((tm, 1), lambda i, j, k: (i, 0)),
            ),
            scratch_shapes=[pltpu.VMEM((tm, tn), jnp.float32),
                            pltpu.VMEM((tm, 1), jnp.float32),
                            pltpu.VMEM((tm, 1), jnp.float32)],
        ),
        # C axis carries the bsum/tgt reduction -> "arbitrary".
        compiler_params=_compiler_params(("parallel", "arbitrary", "arbitrary")),
    )(x_pad, w_pad, iwn_row, siwn_row, label_pad)


# ---------------------------------------------------------------------------
# Wrappers
# ---------------------------------------------------------------------------
def precompute_weights(w, compute_dtype=jnp.bfloat16):
    """Hoistable weight prep: pad+cast W once and compute 1/||W_row||."""
    c, f = w.shape
    tn, tk = _col_tile(c), _col_tile(f)
    c_pad, f_pad = _round_up(c, tn), _round_up(f, tk)
    w_pad = _pad2d(w.astype(compute_dtype), c_pad, f_pad)
    inv_wn = _inv_row_norms(w_pad, tn, tk)               # (c_pad, 1) f32
    return {"w_pad": w_pad,
            "inv_wn_row": inv_wn.reshape(1, c_pad),      # lane-dense (1, C)
            "num_classes": c,
            "num_features": f}


def adacos_forward(x, w=None, label=None, s=None, weights=None,
                   compute_dtype=jnp.bfloat16, out_dtype=jnp.float32):
    """Mirrors AdaCos.forward.  Returns (output, s_new).

    Pass `weights=precompute_weights(W)` to hoist the per-step W cast/pad/norm.
    """
    if weights is None:
        assert w is not None
        weights = precompute_weights(w, compute_dtype)
    w_pad = weights["w_pad"]
    inv_wn_row = weights["inv_wn_row"]
    c = weights["num_classes"]
    f = weights["num_features"]
    c_pad, f_pad = w_pad.shape

    n = x.shape[0]
    assert x.shape[1] == f
    tn, tk = _col_tile(c), _col_tile(f)
    tm = _row_tile(n)
    n_pad = _round_up(n, tm)
    x_pad = _pad2d(x.astype(compute_dtype), n_pad, f_pad)

    if label is None:
        logits_pad = _scaled_logits(x_pad, w_pad, inv_wn_row, tm, tn, tk, out_dtype)
        return logits_pad[:n, :c], s

    if s is None:
        s = math.sqrt(2.0) * math.log(c - 1)
    s = jnp.asarray(s, jnp.float32)
    s_inv_wn_row = s * inv_wn_row        # fold scalar s into per-class vector

    label_pad = jnp.pad(label.astype(jnp.int32), (0, n_pad - n)).reshape(n_pad, 1)

    # Pass 1: adaptive-scale statistics only; the (N, C) logits are never stored.
    bsum_rows, tgt_rows = _stats(x_pad, w_pad, inv_wn_row, s_inv_wn_row,
                                 label_pad, tm, tn, tk, c)

    b_avg = jnp.sum(bsum_rows[:n, 0]) / n
    theta_tgt = jnp.arccos(jnp.clip(tgt_rows[:n, 0],
                                    -1.0 + _EPS_CLIP, 1.0 - _EPS_CLIP))
    # TODO(synk): torch.topk / median has no Pallas primitive; selection over
    # the tiny length-n vector is done with jnp.sort in the wrapper.
    k = n // 2
    theta_med = jnp.sort(theta_tgt)[::-1][k]             # == topk(v, k+1)[0][k]
    s_new = jnp.log(b_avg) / jnp.cos(
        jnp.minimum(jnp.float32(math.pi / 4.0), theta_med))

    # Pass 2: recompute the matmul with s_new folded into the per-class scale
    # and write the final output directly (no (N, C) logits round-trip).
    # Note: on v5e the 2x MXU cost of this restructure is roughly neutral; on
    # v6e/v7x it is a clear bandwidth win.
    out_pad = _scaled_logits(x_pad, w_pad, s_new * inv_wn_row, tm, tn, tk, out_dtype)
    return out_pad[:n, :c], s_new


# ---------------------------------------------------------------------------
# Pure-JAX reference (f32) for sanity checking
# ---------------------------------------------------------------------------
def _reference_forward(x, w, label=None, s=None):
    xn = x / jnp.maximum(jnp.sqrt(jnp.sum(x * x, axis=1, keepdims=True)), _EPS_NORM)
    wn = w / jnp.maximum(jnp.sqrt(jnp.sum(w * w, axis=1, keepdims=True)), _EPS_NORM)
    logits = xn @ wn.T
    if label is None:
        return logits, s
    one_hot = jax.nn.one_hot(label, w.shape[0], dtype=logits.dtype)
    b_avg = jnp.sum(jnp.where(one_hot < 1, jnp.exp(s * logits), 0.0)) / x.shape[0]
    theta = jnp.arccos(jnp.clip(logits, -1.0 + _EPS_CLIP, 1.0 - _EPS_CLIP))
    theta_tgt = jnp.sum(jnp.where(one_hot == 1, theta, 0.0), axis=1)
    k = x.shape[0] // 2
    theta_med = jnp.sort(theta_tgt)[::-1][k]
    s_new = jnp.log(b_avg) / jnp.cos(
        jnp.minimum(jnp.float32(math.pi / 4.0), theta_med))
    return s_new * logits, s_new


if __name__ == "__main__":
    num_features = 32
    num_classes = 10
    batch = 8

    key = jax.random.PRNGKey(0)
    kx, kw, kl = jax.random.split(key, 3)

    x = jax.random.normal(kx, (batch, num_features), dtype=jnp.float32)

    # xavier_uniform_ on W of shape (num_classes, num_features)
    bound = math.sqrt(6.0 / (num_classes + num_features))
    W = jax.random.uniform(kw, (num_classes, num_features),
                           minval=-bound, maxval=bound, dtype=jnp.float32)

    label = jax.random.randint(kl, (batch,), 0, num_classes, dtype=jnp.int32)
    s0 = math.sqrt(2.0) * math.log(num_classes - 1)   # initial adaptive scale

    # Hoisted weight prep (once per optimizer step).
    weights = precompute_weights(W)

    # label=None path: plain cosine logits.
    logits, _ = adacos_forward(x, weights=weights)

    # labeled path: adaptive-scale output + updated s.
    out, s_new = adacos_forward(x, label=label, s=s0, weights=weights)

    jax.block_until_ready((logits, out, s_new))

    # Sanity check vs f32 reference (loose tolerances: bf16 MXU operands).
    ref_logits, _ = _reference_forward(x, W)
    ref_out, ref_s = _reference_forward(x, W, label=label, s=s0)
    assert bool(jnp.allclose(logits, ref_logits, atol=5e-2)), "logits mismatch"
    assert bool(jnp.allclose(s_new, ref_s, rtol=5e-2, atol=5e-2)), "s mismatch"
    assert bool(jnp.allclose(out, ref_out, rtol=5e-2, atol=2e-1)), "output mismatch"

    print("KERNEL_OK")
</pallas_src>

<mosaic_0001>
module attributes {stable_mosaic.version = 11 : i64} {
  func.func @_inv_rownorm_kernel(%arg0: i32, %arg1: i32, %arg2: memref<128x128xbf16, #tpu.memory_space<vmem>>, %arg3: memref<128x1xf32, #tpu.memory_space<vmem>>, %arg4: memref<128x1xf32, #tpu.memory_space<vmem>>) attributes {dimension_semantics = [#tpu.dimension_semantics<parallel>, #tpu.dimension_semantics<arbitrary>], iteration_bounds = array<i64: 1, 1>, scalar_prefetch = 0 : i64, scratch_operands = 1 : i64, tpu.core_type = #tpu.core_type<tc>, window_params = [{transform_indices = @transform_0, window_bounds = array<i64: 128, 128>}, {transform_indices = @transform_1, window_bounds = array<i64: 128, 1>}]} {
    %c0_i32 = arith.constant 0 : i32
    %0 = arith.cmpi eq, %arg1, %c0_i32 : i32
    %1 = arith.extui %0 : i1 to i32
    %c0_i32_0 = arith.constant 0 : i32
    %2 = arith.cmpi ne, %1, %c0_i32_0 : i32
    scf.if %2 {
      %cst_8 = arith.constant 0.000000e+00 : f32
      %14 = vector.broadcast %cst_8 : f32 to vector<128x1xf32>
      %c0_9 = arith.constant 0 : index
      %c0_10 = arith.constant 0 : index
      %15 = vector.load %arg4[%c0_9, %c0_10] : memref<128x1xf32, #tpu.memory_space<vmem>>, vector<128x1xf32>
      tpu.vector_store %arg4[%c0_9, %c0_10], %14 {strides = array<i32>} : memref<128x1xf32, #tpu.memory_space<vmem>>, vector<128x1xf32>,
    } else {
    }
    %c0 = arith.constant 0 : index
    %c0_1 = arith.constant 0 : index
    %3 = vector.load %arg2[%c0, %c0_1] : memref<128x128xbf16, #tpu.memory_space<vmem>>, vector<128x128xbf16>
    %4 = arith.extf %3 : vector<128x128xbf16> to vector<128x128xf32>
    %c0_2 = arith.constant 0 : index
    %c0_3 = arith.constant 0 : index
    %5 = vector.load %arg4[%c0_2, %c0_3] : memref<128x1xf32, #tpu.memory_space<vmem>>, vector<128x1xf32>
    %6 = arith.mulf %4, %4 : vector<128x128xf32>
    %cst = arith.constant dense<0.000000e+00> : vector<128xf32>
    %7 = vector.multi_reduction <add>, %6, %cst [1] : vector<128x128xf32> to vector<128xf32>
    %8 = vector.shape_cast %7 : vector<128xf32> to vector<128x1xf32>
    %9 = arith.addf %5, %8 : vector<128x1xf32>
    %c0_4 = arith.constant 0 : index
    %c0_5 = arith.constant 0 : index
    %10 = vector.load %arg4[%c0_4, %c0_5] : memref<128x1xf32, #tpu.memory_space<vmem>>, vector<128x1xf32>
    tpu.vector_store %arg4[%c0_4, %c0_5], %9 {strides = array<i32>} : memref<128x1xf32, #tpu.memory_space<vmem>>, vector<128x1xf32>,
    %c0_i32_6 = arith.constant 0 : i32
    %11 = arith.cmpi eq, %arg1, %c0_i32_6 : i32
    %12 = arith.extui %11 : i1 to i32
    %c0_i32_7 = arith.constant 0 : i32
    %13 = arith.cmpi ne, %12, %c0_i32_7 : i32
    scf.if %13 {
      %c0_8 = arith.constant 0 : index
      %c0_9 = arith.constant 0 : index
      %14 = vector.load %arg4[%c0_8, %c0_9] : memref<128x1xf32, #tpu.memory_space<vmem>>, vector<128x1xf32>
      %cst_10 = arith.constant 1.000000e-24 : f32
      %15 = vector.broadcast %cst_10 : f32 to vector<128x1xf32>
      %16 = arith.maximumf %14, %15 : vector<128x1xf32>
      %17 = math.rsqrt %16 : vector<128x1xf32>
      %c0_11 = arith.constant 0 : index
      %c0_12 = arith.constant 0 : index
      %18 = vector.load %arg3[%c0_11, %c0_12] : memref<128x1xf32, #tpu.memory_space<vmem>>, vector<128x1xf32>
      tpu.vector_store %arg3[%c0_11, %c0_12], %17 {strides = array<i32>} : memref<128x1xf32, #tpu.memory_space<vmem>>, vector<128x1xf32>,
    } else {
    }
    return
  }
  func.func @transform_0(%arg0: i32, %arg1: i32) -> (i32, i32) {
    %c0_i32 = arith.constant 0 : i32
    return %arg0, %arg1 : i32, i32
  }
  func.func @transform_1(%arg0: i32, %arg1: i32) -> (i32, i32) {
    %c0_i32 = arith.constant 0 : i32
    %c0_i32_0 = arith.constant 0 : i32
    return %arg0, %c0_i32 : i32, i32
  }
}

</mosaic_0001>

<bundles_post_ra>
// kernel: tpu_custom_call.1
= control target key start
LH: loop header
LB: loop body
LE: loop exit
PB: predicated region body
PF: predicated region fallthrough
CT: control target
= control target key end

     0   :  { %6 = vsyncpa [#allocation4], 0  ;;  %s341_s6 = smov [#allocation3]   ;;  %s454_s0 = inlined_call_operand.hbm [shape: bf16[128,128], index: 0, kind: input, shape index: {}]   ;;  %s455_s1 = inlined_call_operand.vmem [shape: f32[128,1], index: 1, kind: output, shape index: {}]  }
   0x1   :  { %s12_s7 = sshll.u32 %s341_s6, 4  ;;  %s13_s7 = int_to_ptr.vmem [resolvable:$true] %s12_s7 }
   0x2   :  { %s327_s8 = scalar_lea.vmem %s13_s7, 1024  ;;  %p332_p1 = scmp.lt.s32.totalorder %s13_s7, %s13_s7 }
   0x3   :  { %p328_p0 = scmp.ne.s32.totalorder %s13_s7, %s327_s8  ;;  %p333_p2 = scmp.lt.s32.totalorder %s327_s8, %s327_s8 }
   0x5   :  { %p334_p3 = por %p333_p2, %p332_p1 }
   0x7   :  { %p335_p4 = pnand %p334_p3, %p328_p0 }
   0x9   :  { %338 = shalt.err (!%p335_p4)
}
   0xa   :  { %s342_s9 = smov 64   ;;  %s343_s10 = smov 4  }
   0xb   :  { %18 = dma.hbm_to_vmem [thread:$0]  %s454_s0, 1024, %s13_s7, [#allocation4], %s342_s9, %s342_s9, %s343_s10  }
   0xc   :  { %339 = dma.done.wait [#allocation4], 1024  }
   0xd   :  { %340 = vsyncadd [#allocation4], 4294966272  ;;  %vm26_vm0 = vcmask 7168   ;;  %v344_v0 = vmov 0.0   ;;  %v276_v1 = vld [vmem:[#allocation3 + $0x8] sm:$0xff]   ;;  %v245_v2 = vld [vmem:[#allocation3] sm:$0xff]  }
   0xe   :  { %29 = vst.msk [vmem:[#allocation2 + $0x10] sm:$0xff] %vm26_vm0, %v344_v0  ;;  %27 = vst.msk [vmem:[#allocation2] sm:$0xff] %vm26_vm0, %v344_v0  ;;  %v250_v3 = vunpack.c.l.bf16 %v276_v1  ;;  %v246_v4 = vunpack.c.l.bf16 %v245_v2  ;;  %v251_v5 = vunpack.c.h.bf16 %v276_v1  ;;  %v247_v6 = vunpack.c.h.bf16 %v245_v2  ;;  %v277_v7 = vld [vmem:[#allocation3 + $0x10] sm:$0xff]   ;;  %v278_v14 = vld [vmem:[#allocation3 + $0x18] sm:$0xff]  }
   0xf   :  { %28 = vst.msk [vmem:[#allocation2 + $0x8] sm:$0xff] %vm26_vm0, %v344_v0  ;;  %30 = vst.msk [vmem:[#allocation2 + $0x18] sm:$0xff] %vm26_vm0, %v344_v0  ;;  %v255_v12 = vunpack.c.h.bf16 %v277_v7  ;;  %v254_v13 = vunpack.c.l.bf16 %v277_v7  ;;  %v259_v17 = vunpack.c.h.bf16 %v278_v14  ;;  %v258_v18 = vunpack.c.l.bf16 %v278_v14  ;;  %v279_v19 = vld [vmem:[#allocation3 + $0x20] sm:$0xff]   ;;  %v280_v24 = vld [vmem:[#allocation3 + $0x28] sm:$0xff]  }
  0x10   :  { %31 = vst.msk [vmem:[#allocation2 + $0x20] sm:$0xff] %vm26_vm0, %v344_v0  ;;  %32 = vst.msk [vmem:[#allocation2 + $0x28] sm:$0xff] %vm26_vm0, %v344_v0  ;;  %v93_v8 = vmul.f32 %v250_v3, %v250_v3  ;;  %v91_v9 = vmul.f32 %v246_v4, %v246_v4  ;;  %v94_v10 = vmul.f32 %v251_v5, %v251_v5  ;;  %v263_v22 = vunpack.c.h.bf16 %v279_v19  ;;  %v281_v29 = vld [vmem:[#allocation3 + $0x30] sm:$0xff]   ;;  %v282_v34 = vld [vmem:[#allocation3 + $0x38] sm:$0xff]  }
  0x11   :  { %33 = vst.msk [vmem:[#allocation2 + $0x30] sm:$0xff] %vm26_vm0, %v344_v0  ;;  %34 = vst.msk [vmem:[#allocation2 + $0x38] sm:$0xff] %vm26_vm0, %v344_v0  ;;  %v92_v11 = vmul.f32 %v247_v6, %v247_v6  ;;  %v96_v15 = vmul.f32 %v255_v12, %v255_v12  ;;  %v95_v16 = vmul.f32 %v254_v13, %v254_v13  ;;  %v262_v23 = vunpack.c.l.bf16 %v279_v19 }
  0x12   :  { %35 = vst.msk [vmem:[#allocation2 + $0x40] sm:$0xff] %vm26_vm0, %v344_v0  ;;  %36 = vst.msk [vmem:[#allocation2 + $0x48] sm:$0xff] %vm26_vm0, %v344_v0  ;;  %111 = vadd.xlane.f32.xlu1 %v93_v8  ;;  %107 = vadd.xlane.f32.xlu0 %v91_v9  ;;  %v98_v20 = vmul.f32 %v259_v17, %v259_v17  ;;  %v97_v21 = vmul.f32 %v258_v18, %v258_v18  ;;  %v267_v27 = vunpack.c.h.bf16 %v280_v24 }
  0x13   :  { %37 = vst.msk [vmem:[#allocation2 + $0x50] sm:$0xff] %vm26_vm0, %v344_v0  ;;  %38 = vst.msk [vmem:[#allocation2 + $0x58] sm:$0xff] %vm26_vm0, %v344_v0  ;;  %v100_v25 = vmul.f32 %v263_v22, %v263_v22  ;;  %v99_v26 = vmul.f32 %v262_v23, %v262_v23  ;;  %v266_v28 = vunpack.c.l.bf16 %v280_v24  ;;  %v271_v32 = vunpack.c.h.bf16 %v281_v29 }
  0x14   :  { %39 = vst.msk [vmem:[#allocation2 + $0x60] sm:$0xff] %vm26_vm0, %v344_v0  ;;  %40 = vst.msk [vmem:[#allocation2 + $0x68] sm:$0xff] %vm26_vm0, %v344_v0  ;;  %v102_v30 = vmul.f32 %v267_v27, %v267_v27  ;;  %v270_v33 = vunpack.c.l.bf16 %v281_v29  ;;  %v275_v37 = vunpack.c.h.bf16 %v282_v34  ;;  %v274_v38 = vunpack.c.l.bf16 %v282_v34 }
  0x15   :  { %41 = vst.msk [vmem:[#allocation2 + $0x70] sm:$0xff] %vm26_vm0, %v344_v0  ;;  %42 = vst.msk [vmem:[#allocation2 + $0x78] sm:$0xff] %vm26_vm0, %v344_v0  ;;  %v101_v31 = vmul.f32 %v266_v28, %v266_v28  ;;  %v104_v35 = vmul.f32 %v271_v32, %v271_v32  ;;  %v77_v41 = vld [vmem:[#allocation2 + $0x10] sm:$0xff]  ;;  %v75_v42 = vld [vmem:[#allocation2] sm:$0xff] }
  0x16   :  { %113 = vadd.xlane.f32.xlu1 %v94_v10  ;;  %109 = vadd.xlane.f32.xlu0 %v92_v11  ;;  %v103_v36 = vmul.f32 %v270_v33, %v270_v33  ;;  %v106_v39 = vmul.f32 %v275_v37, %v275_v37  ;;  %v105_v40 = vmul.f32 %v274_v38, %v274_v38  ;;  %v78_v47 = vld [vmem:[#allocation2 + $0x18] sm:$0xff]  ;;  %v76_v48 = vld [vmem:[#allocation2 + $0x8] sm:$0xff] }
  0x17   :  { %v80_v53 = vld [vmem:[#allocation2 + $0x28] sm:$0xff]  ;;  %v79_v54 = vld [vmem:[#allocation2 + $0x20] sm:$0xff] }
  0x18   :  { %v82_v59 = vld [vmem:[#allocation2 + $0x38] sm:$0xff]  ;;  %v81_v62 = vld [vmem:[#allocation2 + $0x30] sm:$0xff] }
  0x19   :  { %v84_v5 = vld [vmem:[#allocation2 + $0x48] sm:$0xff]  ;;  %v83_v8 = vld [vmem:[#allocation2 + $0x40] sm:$0xff] }
  0x1a   :  { %117 = vadd.xlane.f32.xlu1 %v96_v15  ;;  %115 = vadd.xlane.f32.xlu0 %v95_v16  ;;  %v86_v15 = vld [vmem:[#allocation2 + $0x58] sm:$0xff]  ;;  %v85_v18 = vld [vmem:[#allocation2 + $0x50] sm:$0xff] }
  0x1b   :  { %v87_v28 = vld [vmem:[#allocation2 + $0x60] sm:$0xff] }
  0x1e   :  { %121 = vadd.xlane.f32.xlu1 %v98_v20  ;;  %119 = vadd.xlane.f32.xlu0 %v97_v21 }
  0x22   :  { %125 = vadd.xlane.f32.xlu1 %v100_v25  ;;  %123 = vadd.xlane.f32.xlu0 %v99_v26  ;;  %v88_v25 = vld [vmem:[#allocation2 + $0x68] sm:$0xff] }
  0x26   :  { %129 = vadd.xlane.f32.xlu1 %v102_v30  ;;  %127 = vadd.xlane.f32.xlu0 %v101_v31 }
  0x2a   :  { %133 = vadd.xlane.f32.xlu1 %v104_v35  ;;  %131 = vadd.xlane.f32.xlu0 %v103_v36  ;;  %v90_v35 = vld [vmem:[#allocation2 + $0x78] sm:$0xff] }
  0x2e   :  { %137 = vadd.xlane.f32.xlu1 %v106_v39  ;;  %135 = vadd.xlane.f32.xlu0 %v105_v40  ;;  %v89_v39 = vld [vmem:[#allocation2 + $0x70] sm:$0xff] }
  0x9b   :  { %v112_v43 = vpop.xlane.xlu1 %111  ;;  %v108_v44 = vpop.xlane.xlu0 %107 }
  0x9c   :  { %v141_v45 = vadd.f32 %v112_v43, %v77_v41  ;;  %v139_v46 = vadd.f32 %v108_v44, %v75_v42 }
  0x9e   :  { %158 = vst.msk [vmem:[#allocation2 + $0x10] sm:$0xff] %vm26_vm0, %v141_v45  ;;  %156 = vst.msk [vmem:[#allocation2] sm:$0xff] %vm26_vm0, %v139_v46 }
  0x9f   :  { %v114_v49 = vpop.xlane.xlu1 %113  ;;  %v110_v50 = vpop.xlane.xlu0 %109 }
  0xa0   :  { %v142_v51 = vadd.f32 %v114_v49, %v78_v47  ;;  %v140_v52 = vadd.f32 %v110_v50, %v76_v48 }
  0xa2   :  { %159 = vst.msk [vmem:[#allocation2 + $0x18] sm:$0xff] %vm26_vm0, %v142_v51  ;;  %157 = vst.msk [vmem:[#allocation2 + $0x8] sm:$0xff] %vm26_vm0, %v140_v52 }
  0xa3   :  { %v118_v55 = vpop.xlane.xlu1 %117  ;;  %v116_v56 = vpop.xlane.xlu0 %115 }
  0xa4   :  { %v144_v57 = vadd.f32 %v118_v55, %v80_v53  ;;  %v143_v58 = vadd.f32 %v116_v56, %v79_v54 }
  0xa5   :  { %v177_v60 = vld [vmem:[#allocation2 + $0x10] sm:$0xff]  ;;  %v175_v61 = vld [vmem:[#allocation2] sm:$0xff] }
  0xa6   :  { %v193_v63 = vmax.f32 %v177_v60, 1e-24  ;;  %v191_v0 = vmax.f32 %v175_v61, 1e-24  ;;  %161 = vst.msk [vmem:[#allocation2 + $0x28] sm:$0xff] %vm26_vm0, %v144_v57  ;;  %160 = vst.msk [vmem:[#allocation2 + $0x20] sm:$0xff] %vm26_vm0, %v143_v58 }
  0xa7   :  { %v122_v1 = vpop.xlane.xlu1 %121  ;;  %v120_v2 = vpop.xlane.xlu0 %119 }
  0xa8   :  { %287 = vrsqrt.f32 %v193_v63  ;;  %v146_v3 = vadd.f32 %v122_v1, %v82_v59  ;;  %v145_v4 = vadd.f32 %v120_v2, %v81_v62 }
  0xa9   :  { %289 = vrsqrt.f32 %v191_v0  ;;  %v178_v6 = vld [vmem:[#allocation2 + $0x18] sm:$0xff]  ;;  %v176_v7 = vld [vmem:[#allocation2 + $0x8] sm:$0xff] }
  0xaa   :  { %v194_v9 = vmax.f32 %v178_v6, 1e-24  ;;  %v192_v10 = vmax.f32 %v176_v7, 1e-24  ;;  %163 = vst.msk [vmem:[#allocation2 + $0x38] sm:$0xff] %vm26_vm0, %v146_v3  ;;  %162 = vst.msk [vmem:[#allocation2 + $0x30] sm:$0xff] %vm26_vm0, %v145_v4 }
  0xab   :  { %v126_v11 = vpop.xlane.xlu1 %125  ;;  %v124_v12 = vpop.xlane.xlu0 %123 }
  0xac   :  { %291 = vrsqrt.f32 %v194_v9  ;;  %v148_v13 = vadd.f32 %v126_v11, %v84_v5  ;;  %v147_v14 = vadd.f32 %v124_v12, %v83_v8 }
  0xad   :  { %293 = vrsqrt.f32 %v192_v10  ;;  %v180_v16 = vld [vmem:[#allocation2 + $0x28] sm:$0xff]  ;;  %v179_v17 = vld [vmem:[#allocation2 + $0x20] sm:$0xff] }
  0xae   :  { %v196_v19 = vmax.f32 %v180_v16, 1e-24  ;;  %v195_v20 = vmax.f32 %v179_v17, 1e-24  ;;  %165 = vst.msk [vmem:[#allocation2 + $0x48] sm:$0xff] %vm26_vm0, %v148_v13  ;;  %164 = vst.msk [vmem:[#allocation2 + $0x40] sm:$0xff] %vm26_vm0, %v147_v14 }
  0xaf   :  { %v130_v21 = vpop.xlane.xlu1 %129  ;;  %v128_v22 = vpop.xlane.xlu0 %127 }
  0xb0   :  { %295 = vrsqrt.f32 %v196_v19  ;;  %v150_v23 = vadd.f32 %v130_v21, %v86_v15  ;;  %v149_v24 = vadd.f32 %v128_v22, %v85_v18 }
  0xb1   :  { %297 = vrsqrt.f32 %v195_v20  ;;  %v182_v26 = vld [vmem:[#allocation2 + $0x38] sm:$0xff]  ;;  %v181_v27 = vld [vmem:[#allocation2 + $0x30] sm:$0xff] }
  0xb2   :  { %v198_v29 = vmax.f32 %v182_v26, 1e-24  ;;  %v197_v30 = vmax.f32 %v181_v27, 1e-24  ;;  %167 = vst.msk [vmem:[#allocation2 + $0x58] sm:$0xff] %vm26_vm0, %v150_v23  ;;  %166 = vst.msk [vmem:[#allocation2 + $0x50] sm:$0xff] %vm26_vm0, %v149_v24 }
  0xb3   :  { %v134_v31 = vpop.xlane.xlu1 %133  ;;  %v132_v32 = vpop.xlane.xlu0 %131 }
  0xb4   :  { %299 = vrsqrt.f32 %v198_v29  ;;  %v152_v33 = vadd.f32 %v134_v31, %v88_v25  ;;  %v151_v34 = vadd.f32 %v132_v32, %v87_v28 }
  0xb5   :  { %v288_v36 = vpop.eup %287  ;;  %301 = vrsqrt.f32 %v197_v30  ;;  %v184_v37 = vld [vmem:[#allocation2 + $0x48] sm:$0xff]  ;;  %v183_v38 = vld [vmem:[#allocation2 + $0x40] sm:$0xff] }
  0xb6   :  { %v290_v40 = vpop.eup %289  ;;  %225 = vst.msk [vmem:[%s455_s1 + $0x10] sm:$0xff] %vm26_vm0, %v288_v36  ;;  %v200_v41 = vmax.f32 %v184_v37, 1e-24  ;;  %v199_v42 = vmax.f32 %v183_v38, 1e-24  ;;  %169 = vst.msk [vmem:[#allocation2 + $0x68] sm:$0xff] %vm26_vm0, %v152_v33 }
  0xb7   :  { %168 = vst.msk [vmem:[#allocation2 + $0x60] sm:$0xff] %vm26_vm0, %v151_v34  ;;  %223 = vst.msk [vmem:[%s455_s1] sm:$0xff] %vm26_vm0, %v290_v40  ;;  %v138_v43 = vpop.xlane.xlu1 %137  ;;  %v136_v44 = vpop.xlane.xlu0 %135 }
  0xb8   :  { %303 = vrsqrt.f32 %v200_v41  ;;  %v154_v45 = vadd.f32 %v138_v43, %v90_v35  ;;  %v153_v46 = vadd.f32 %v136_v44, %v89_v39 }
  0xb9   :  { %v292_v47 = vpop.eup %291  ;;  %305 = vrsqrt.f32 %v199_v42  ;;  %v186_v48 = vld [vmem:[#allocation2 + $0x58] sm:$0xff]  ;;  %v185_v49 = vld [vmem:[#allocation2 + $0x50] sm:$0xff] }
  0xba   :  { %v294_v50 = vpop.eup %293  ;;  %226 = vst.msk [vmem:[%s455_s1 + $0x18] sm:$0xff] %vm26_vm0, %v292_v47  ;;  %v202_v51 = vmax.f32 %v186_v48, 1e-24  ;;  %v201_v52 = vmax.f32 %v185_v49, 1e-24  ;;  %171 = vst.msk [vmem:[#allocation2 + $0x78] sm:$0xff] %vm26_vm0, %v154_v45 }
  0xbb   :  { %170 = vst.msk [vmem:[#allocation2 + $0x70] sm:$0xff] %vm26_vm0, %v153_v46  ;;  %224 = vst.msk [vmem:[%s455_s1 + $0x8] sm:$0xff] %vm26_vm0, %v294_v50 }
  0xbc   :  { %307 = vrsqrt.f32 %v202_v51 }
  0xbd   :  { %v296_v53 = vpop.eup %295  ;;  %309 = vrsqrt.f32 %v201_v52  ;;  %v188_v54 = vld [vmem:[#allocation2 + $0x68] sm:$0xff] }
  0xbe   :  { %v187_v55 = vld [vmem:[#allocation2 + $0x60] sm:$0xff]  ;;  %v298_v56 = vpop.eup %297  ;;  %228 = vst.msk [vmem:[%s455_s1 + $0x28] sm:$0xff] %vm26_vm0, %v296_v53  ;;  %v204_v57 = vmax.f32 %v188_v54, 1e-24 }
  0xbf   :  { %v203_v58 = vmax.f32 %v187_v55, 1e-24  ;;  %227 = vst.msk [vmem:[%s455_s1 + $0x20] sm:$0xff] %vm26_vm0, %v298_v56 }
  0xc0   :  { %311 = vrsqrt.f32 %v204_v57 }
  0xc1   :  { %v300_v59 = vpop.eup %299  ;;  %313 = vrsqrt.f32 %v203_v58  ;;  %v190_v60 = vld [vmem:[#allocation2 + $0x78] sm:$0xff] }
  0xc2   :  { %v189_v61 = vld [vmem:[#allocation2 + $0x70] sm:$0xff]  ;;  %v302_v62 = vpop.eup %301  ;;  %230 = vst.msk [vmem:[%s455_s1 + $0x38] sm:$0xff] %vm26_vm0, %v300_v59  ;;  %v206_v63 = vmax.f32 %v190_v60, 1e-24 }
  0xc3   :  { %v205_v0 = vmax.f32 %v189_v61, 1e-24  ;;  %229 = vst.msk [vmem:[%s455_s1 + $0x30] sm:$0xff] %vm26_vm0, %v302_v62 }
  0xc4   :  { %315 = vrsqrt.f32 %v206_v63 }
  0xc5   :  { %v304_v1 = vpop.eup %303  ;;  %317 = vrsqrt.f32 %v205_v0 }
  0xc6   :  { %v306_v2 = vpop.eup %305  ;;  %232 = vst.msk [vmem:[%s455_s1 + $0x48] sm:$0xff] %vm26_vm0, %v304_v1 }
  0xc7   :  { %231 = vst.msk [vmem:[%s455_s1 + $0x40] sm:$0xff] %vm26_vm0, %v306_v2 }
  0xc9   :  { %v308_v3 = vpop.eup %307 }
  0xca   :  { %v310_v4 = vpop.eup %309  ;;  %234 = vst.msk [vmem:[%s455_s1 + $0x58] sm:$0xff] %vm26_vm0, %v308_v3 }
  0xcb   :  { %233 = vst.msk [vmem:[%s455_s1 + $0x50] sm:$0xff] %vm26_vm0, %v310_v4 }
  0xcd   :  { %v312_v5 = vpop.eup %311 }
  0xce   :  { %v314_v6 = vpop.eup %313  ;;  %236 = vst.msk [vmem:[%s455_s1 + $0x68] sm:$0xff] %vm26_vm0, %v312_v5 }
  0xcf   :  { %235 = vst.msk [vmem:[%s455_s1 + $0x60] sm:$0xff] %vm26_vm0, %v314_v6 }
  0xd1   :  { %v316_v7 = vpop.eup %315 }
  0xd2   :  { %v318_v8 = vpop.eup %317  ;;  %238 = vst.msk [vmem:[%s455_s1 + $0x78] sm:$0xff] %vm26_vm0, %v316_v7 }
  0xd3   :  { %237 = vst.msk [vmem:[%s455_s1 + $0x70] sm:$0xff] %vm26_vm0, %v318_v8 }
  0xd4   :  { %243 = vsyncpa [#allocation4], 1 }

</bundles_post_ra>
